<compile_context>
chip_gen: v7x
topology: tpu7x:2x2x1
jax: 0.10.0
libtpu: 0.0.40
codegen_flags: <defaults>
</compile_context>

<pallas_src>
import functools

import jax
import jax.numpy as jnp
from jax.experimental import pallas as pl
from jax.experimental.pallas import tpu as pltpu


def _density_block_kernel(x_ref, wt_ref, b_ref, z_ref, o_ref, *, num_grid):
    # x_ref: (tm, ind), wt_ref: (outd_pad, ind), b_ref: (outd_pad, 1),
    # z_ref: (1, tm), o_ref: (1, tm)

    # logits^T[g, r] = sum_k W[k, g] * x[r, k] + b[g] -> rows on the lane axis.
    logits_t = jax.lax.dot_general(
        wt_ref[...], x_ref[...],
        dimension_numbers=(((1,), (1,)), ((), ())),
        preferred_element_type=jnp.float32)                 # (outd_pad, tm) f32
    logits_t = logits_t + b_ref[...]                        # lane broadcast

    # Softmax over the grid axis (sublane reductions), normalisation folded in
    # at the end.  Padded grid rows have bias -1e30 -> exp == 0.
    m = jnp.max(logits_t, axis=0, keepdims=True)            # (1, tm)
    e = jnp.exp(logits_t - m)                                # (outd_pad, tm)
    denom = jnp.sum(e, axis=0, keepdims=True)                # (1, tm)

    # comp_grid: U = ceil(z*B); inter = 1-(U-z*B); L = U-1; L += (L<0)
    z = z_ref[...]                                           # (1, tm) f32
    zb = z * jnp.float32(num_grid)
    U = jnp.ceil(zb)
    inter = 1.0 - (U - zb)
    L = U - 1.0
    L = jnp.where(L < 0.0, L + 1.0, L)
    # Clamp: intentional (benign) difference vs. PyTorch for z outside [0, 1].
    L_i = jnp.clip(L.astype(jnp.int32), 0, num_grid)         # (1, tm)
    U_i = jnp.clip(U.astype(jnp.int32), 0, num_grid)

    # Fused one-hot gather + interpolation + softmax normalisation:
    #   out = (sum_g e[g] * w[g]) / denom
    #   w[g] = (1-inter)*[g==L] + inter*[g==U]   (sums to 1 when L == U)
    g = jax.lax.broadcasted_iota(jnp.int32, logits_t.shape, 0)
    w_sel = (jnp.where(g == L_i, 1.0 - inter, 0.0)
             + jnp.where(g == U_i, inter, 0.0))               # (outd_pad, tm)
    num = jnp.sum(e * w_sel, axis=0, keepdims=True)           # (1, tm)
    res = num * pl.reciprocal(denom, approx=False)            # exact: 1e-5 tol
    o_ref[...] = res.astype(o_ref.dtype)


def _vmem_capacity_bytes():
    try:
        return int(pltpu.get_tpu_info().vmem_capacity_bytes)
    except Exception:
        return 64 << 20          # conservative default (v7x per-core VMEM)


def _choose_tm(n_rows, ind, itemsize):
    """Byte-budgeted row tile.

    Targets an x tile of ~2-4 MiB (measured HBM-roofline sweet spot), capped
    generation-aware so the double-buffered tile + f32 intermediates stay well
    inside scoped VMEM (v7x: 64 MiB physical vs 128 MiB on v5e/v6e), kept a
    multiple of 128 (lane-dense (1, tm) z/out blocks), and shrunk only as far
    as needed to keep >= 4 grid steps (>= 2 per v7x TensorCore).
    """
    vmem = _vmem_capacity_bytes()
    tile_budget = max(256 << 10, min(4 << 20, vmem // 32))   # v7x -> 2 MiB
    tm = max(128, (tile_budget // (ind * itemsize)) // 128 * 128)
    tm = min(tm, 32768)                          # bound f32 intermediates
    tm = min(tm, -(-n_rows // 128) * 128)        # no bigger than the problem
    while tm > 128 and -(-n_rows // tm) < 4:     # keep >= 4 steps if possible
        tm = max(128, (tm // 2) // 128 * 128)
    return tm


def density_block_forward(z, x, weight, bias, num_grid, *, tm=None):
    """Pallas forward for Density_Block.  Returns shape (N,) float32."""
    N, ind = x.shape
    outd = num_grid + 1
    assert weight.shape == (ind, outd), weight.shape

    # Pad the tiny grid axis to a sublane multiple (17 -> 24); padded columns
    # get a -1e30 bias -> exp == 0 and L/U never select them (same vreg count).
    outd_pad = -(-outd // 8) * 8

    # Weight consumed in x's dtype (bf16 x => bf16 MXU operands, f32 acc).
    w_t = jnp.zeros((outd_pad, ind), x.dtype).at[:outd, :].set(
        jnp.asarray(weight, x.dtype).T)
    if bias is None:
        bias = jnp.zeros((outd,), jnp.float32)
    b2 = jnp.full((outd_pad, 1), -1e30, jnp.float32).at[:outd, 0].set(
        jnp.asarray(bias, jnp.float32))
    z2 = jnp.asarray(z, jnp.float32).reshape(1, N)

    itemsize = jnp.dtype(x.dtype).itemsize
    if tm is None:
        tm = _choose_tm(N, ind, itemsize)
    assert tm % 128 == 0, tm

    # Pad rows up to a multiple of tm; padded rows are inert and sliced off.
    n_rows = -(-N // tm) * tm
    pad = n_rows - N
    if pad:
        x = jnp.pad(x, ((0, pad), (0, 0)))
        z2 = jnp.pad(z2, ((0, 0), (0, pad)))
    grid = (n_rows // tm,)

    cost = pl.CostEstimate(
        flops=2 * n_rows * ind * outd_pad,
        transcendentals=n_rows * outd_pad,
        bytes_accessed=(n_rows * ind * itemsize          # x (dominant)
                        + ind * outd_pad * itemsize      # weight^T
                        + outd_pad * 4                   # bias
                        + n_rows * 4                     # z
                        + n_rows * 4),                   # out
    )

    out = pl.pallas_call(
        functools.partial(_density_block_kernel, num_grid=num_grid),
        out_shape=jax.ShapeDtypeStruct((1, n_rows), jnp.float32),
        grid_spec=pltpu.PrefetchScalarGridSpec(
            num_scalar_prefetch=0,
            grid=grid,
            in_specs=[
                pl.BlockSpec((tm, ind), lambda i: (i, 0)),        # x tile
                pl.BlockSpec((outd_pad, ind), lambda i: (0, 0)),  # W^T resident
                pl.BlockSpec((outd_pad, 1), lambda i: (0, 0)),    # bias resident
                pl.BlockSpec((1, tm), lambda i: (0, i)),          # z (lane-major)
            ],
            out_specs=pl.BlockSpec((1, tm), lambda i: (0, i)),    # lane-dense
        ),
        compiler_params=pltpu.CompilerParams(
            dimension_semantics=("parallel",),
            vmem_limit_bytes=min(_vmem_capacity_bytes() // 2, 64 << 20)),
        cost_estimate=cost,
    )(x, w_t, b2, z2)
    return out[0, :N]


def density_block_reference(z, x, weight, bias, num_grid):
    # Plain-JAX reference (mirrors the PyTorch forward).
    logits = x.astype(jnp.float32) @ weight.astype(jnp.float32) + bias
    p = jax.nn.softmax(logits, axis=1)
    zb = z * num_grid
    U = jnp.ceil(zb)
    inter = 1.0 - (U - zb)
    L = U - 1.0
    L = jnp.where(L < 0, L + 1.0, L)
    rows = jnp.arange(x.shape[0])
    L_out = p[rows, L.astype(jnp.int32)]
    U_out = p[rows, U.astype(jnp.int32)]
    return L_out + (U_out - L_out) * inter


if __name__ == "__main__":
    num_grid = 16          # B -> outd = 17
    ind = 32
    N = 2000               # not a multiple of the tile: exercises row padding

    key = jax.random.PRNGKey(0)
    k_w, k_b, k_x, k_z = jax.random.split(key, 4)

    # nn.Parameter(torch.rand(...)) -> uniform [0, 1)
    weight = jax.random.uniform(k_w, (ind, num_grid + 1), dtype=jnp.float32)
    bias = jax.random.uniform(k_b, (num_grid + 1,), dtype=jnp.float32)

    x = jax.random.uniform(k_x, (N, ind), dtype=jnp.float32)
    z = jax.random.uniform(k_z, (N,), dtype=jnp.float32)     # bounded in [0, 1]

    ref = density_block_reference(z, x, weight, bias, num_grid)

    # f32 path (tight tolerance).
    out = jax.block_until_ready(
        density_block_forward(z, x, weight, bias, num_grid))
    assert out.shape == (N,), out.shape
    assert jnp.allclose(out, ref, atol=1e-5, rtol=1e-5)

    # bf16 activation/weight path (halves x HBM traffic); looser tolerance.
    out_bf16 = jax.block_until_ready(
        density_block_forward(z, x.astype(jnp.bfloat16), weight, bias, num_grid))
    assert out_bf16.shape == (N,)
    assert jnp.allclose(out_bf16, ref, atol=5e-2, rtol=5e-2)

    print("KERNEL_OK")
</pallas_src>

<mosaic_0001>
module attributes {stable_mosaic.version = 11 : i64} {
  func.func @_density_block_kernel(%arg0: i32, %arg1: memref<512x32xf32, #tpu.memory_space<vmem>>, %arg2: memref<24x32xf32, #tpu.memory_space<vmem>>, %arg3: memref<24x1xf32, #tpu.memory_space<vmem>>, %arg4: memref<1x512xf32, #tpu.memory_space<vmem>>, %arg5: memref<1x512xf32, #tpu.memory_space<vmem>>) attributes {dimension_semantics = [#tpu.dimension_semantics<parallel>], iteration_bounds = array<i64: 4>, scalar_prefetch = 0 : i64, scratch_operands = 0 : i64, tpu.core_type = #tpu.core_type<tc>, window_params = [{transform_indices = @transform_0, window_bounds = array<i64: 512, 32>}, {pipeline_mode = #tpu.pipeline_mode<synchronous>, transform_indices = @transform_1, window_bounds = array<i64: 24, 32>}, {pipeline_mode = #tpu.pipeline_mode<synchronous>, transform_indices = @transform_2, window_bounds = array<i64: 24, 1>}, {transform_indices = @transform_3, window_bounds = array<i64: 1, 512>}, {transform_indices = @transform_4, window_bounds = array<i64: 1, 512>}]} {
    %c0 = arith.constant 0 : index
    %c0_0 = arith.constant 0 : index
    %0 = vector.load %arg2[%c0, %c0_0] : memref<24x32xf32, #tpu.memory_space<vmem>>, vector<24x32xf32>
    %c0_1 = arith.constant 0 : index
    %c0_2 = arith.constant 0 : index
    %1 = vector.load %arg1[%c0_1, %c0_2] : memref<512x32xf32, #tpu.memory_space<vmem>>, vector<512x32xf32>
    %cst = arith.constant dense<0.000000e+00> : vector<24x512xf32>
    %2 = tpu.matmul %0, %1, %cst {dimension_numbers = #tpu.dot_dimension_numbers<[1], [1], [0], [0], [0, 0, 1, 0], [], []>} : vector<24x32xf32>, vector<512x32xf32>, vector<24x512xf32> -> vector<24x512xf32>
    %c0_3 = arith.constant 0 : index
    %c0_4 = arith.constant 0 : index
    %3 = vector.load %arg3[%c0_3, %c0_4] : memref<24x1xf32, #tpu.memory_space<vmem>>, vector<24x1xf32>
    %4 = vector.broadcast %3 : vector<24x1xf32> to vector<24x512xf32>
    %5 = arith.addf %2, %4 : vector<24x512xf32>
    %cst_5 = arith.constant dense<0xFF800000> : vector<512xf32>
    %6 = vector.multi_reduction <maximumf>, %5, %cst_5 [0] : vector<24x512xf32> to vector<512xf32>
    %7 = vector.shape_cast %6 : vector<512xf32> to vector<1x512xf32>
    %8 = vector.broadcast %7 : vector<1x512xf32> to vector<24x512xf32>
    %9 = arith.subf %5, %8 : vector<24x512xf32>
    %10 = math.exp %9 : vector<24x512xf32>
    %cst_6 = arith.constant dense<0.000000e+00> : vector<512xf32>
    %11 = vector.multi_reduction <add>, %10, %cst_6 [0] : vector<24x512xf32> to vector<512xf32>
    %12 = vector.shape_cast %11 : vector<512xf32> to vector<1x512xf32>
    %c0_7 = arith.constant 0 : index
    %c0_8 = arith.constant 0 : index
    %13 = vector.load %arg4[%c0_7, %c0_8] : memref<1x512xf32, #tpu.memory_space<vmem>>, vector<1x512xf32>
    %cst_9 = arith.constant 1.600000e+01 : f32
    %14 = vector.broadcast %cst_9 : f32 to vector<1x512xf32>
    %15 = arith.mulf %13, %14 : vector<1x512xf32>
    %16 = math.ceil %15 : vector<1x512xf32>
    %17 = arith.subf %16, %15 : vector<1x512xf32>
    %cst_10 = arith.constant 1.000000e+00 : f32
    %18 = vector.broadcast %cst_10 : f32 to vector<1x512xf32>
    %19 = arith.subf %18, %17 : vector<1x512xf32>
    %cst_11 = arith.constant 1.000000e+00 : f32
    %20 = vector.broadcast %cst_11 : f32 to vector<1x512xf32>
    %21 = arith.subf %16, %20 : vector<1x512xf32>
    %cst_12 = arith.constant 0.000000e+00 : f32
    %22 = vector.broadcast %cst_12 : f32 to vector<1x512xf32>
    %23 = arith.cmpf olt, %21, %22 : vector<1x512xf32>
    %cst_13 = arith.constant 1.000000e+00 : f32
    %24 = vector.broadcast %cst_13 : f32 to vector<1x512xf32>
    %25 = arith.addf %21, %24 : vector<1x512xf32>
    %26 = arith.select %23, %25, %21 : vector<1x512xi1>, vector<1x512xf32>
    %27 = arith.fptosi %26 : vector<1x512xf32> to vector<1x512xi32>
    %c0_i32 = arith.constant 0 : i32
    %c16_i32 = arith.constant 16 : i32
    %28 = vector.broadcast %c0_i32 : i32 to vector<1x512xi32>
    %29 = arith.maxsi %28, %27 : vector<1x512xi32>
    %30 = vector.broadcast %c16_i32 : i32 to vector<1x512xi32>
    %31 = arith.minsi %30, %29 : vector<1x512xi32>
    %32 = arith.fptosi %16 : vector<1x512xf32> to vector<1x512xi32>
    %c0_i32_14 = arith.constant 0 : i32
    %c16_i32_15 = arith.constant 16 : i32
    %33 = vector.broadcast %c0_i32_14 : i32 to vector<1x512xi32>
    %34 = arith.maxsi %33, %32 : vector<1x512xi32>
    %35 = vector.broadcast %c16_i32_15 : i32 to vector<1x512xi32>
    %36 = arith.minsi %35, %34 : vector<1x512xi32>
    %37 = tpu.iota {dimensions = array<i32: 0>} : vector<24x512xi32>
    %38 = vector.broadcast %31 : vector<1x512xi32> to vector<24x512xi32>
    %39 = arith.cmpi eq, %37, %38 : vector<24x512xi32>
    %cst_16 = arith.constant 1.000000e+00 : f32
    %40 = vector.broadcast %cst_16 : f32 to vector<1x512xf32>
    %41 = arith.subf %40, %19 : vector<1x512xf32>
    %cst_17 = arith.constant 0.000000e+00 : f32
    %42 = vector.shape_cast %41 : vector<1x512xf32> to vector<1x512xf32>
    %43 = vector.broadcast %42 : vector<1x512xf32> to vector<24x512xf32>
    %44 = vector.broadcast %cst_17 : f32 to vector<24x512xf32>
    %45 = arith.select %39, %43, %44 : vector<24x512xi1>, vector<24x512xf32>
    %46 = vector.broadcast %36 : vector<1x512xi32> to vector<24x512xi32>
    %47 = arith.cmpi eq, %37, %46 : vector<24x512xi32>
    %cst_18 = arith.constant 0.000000e+00 : f32
    %48 = vector.shape_cast %19 : vector<1x512xf32> to vector<1x512xf32>
    %49 = vector.broadcast %48 : vector<1x512xf32> to vector<24x512xf32>
    %50 = vector.broadcast %cst_18 : f32 to vector<24x512xf32>
    %51 = arith.select %47, %49, %50 : vector<24x512xi1>, vector<24x512xf32>
    %52 = arith.addf %45, %51 : vector<24x512xf32>
    %53 = arith.mulf %10, %52 : vector<24x512xf32>
    %cst_19 = arith.constant dense<0.000000e+00> : vector<512xf32>
    %54 = vector.multi_reduction <add>, %53, %cst_19 [0] : vector<24x512xf32> to vector<512xf32>
    %55 = vector.shape_cast %54 : vector<512xf32> to vector<1x512xf32>
    %56 = tpu.reciprocal %12 : vector<1x512xf32> -> vector<1x512xf32>
    %57 = arith.mulf %55, %56 : vector<1x512xf32>
    %c0_20 = arith.constant 0 : index
    %c0_21 = arith.constant 0 : index
    %58 = vector.load %arg5[%c0_20, %c0_21] : memref<1x512xf32, #tpu.memory_space<vmem>>, vector<1x512xf32>
    tpu.vector_store %arg5[%c0_20, %c0_21], %57 {strides = array<i32>} : memref<1x512xf32, #tpu.memory_space<vmem>>, vector<1x512xf32>,
    return
  }
  func.func @transform_0(%arg0: i32) -> (i32, i32) {
    %c0_i32 = arith.constant 0 : i32
    %c0_i32_0 = arith.constant 0 : i32
    return %arg0, %c0_i32 : i32, i32
  }
  func.func @transform_1(%arg0: i32) -> (i32, i32) {
    %c0_i32 = arith.constant 0 : i32
    %c0_i32_0 = arith.constant 0 : i32
    %c0_i32_1 = arith.constant 0 : i32
    return %c0_i32, %c0_i32_0 : i32, i32
  }
  func.func @transform_2(%arg0: i32) -> (i32, i32) {
    %c0_i32 = arith.constant 0 : i32
    %c0_i32_0 = arith.constant 0 : i32
    %c0_i32_1 = arith.constant 0 : i32
    return %c0_i32, %c0_i32_0 : i32, i32
  }
  func.func @transform_3(%arg0: i32) -> (i32, i32) {
    %c0_i32 = arith.constant 0 : i32
    %c0_i32_0 = arith.constant 0 : i32
    return %c0_i32, %arg0 : i32, i32
  }
  func.func @transform_4(%arg0: i32) -> (i32, i32) {
    %c0_i32 = arith.constant 0 : i32
    %c0_i32_0 = arith.constant 0 : i32
    return %c0_i32, %arg0 : i32, i32
  }
}

</mosaic_0001>

<bundles_post_ra>
// kernel: tpu_custom_call.1
= control target key start
LH: loop header
LB: loop body
LE: loop exit
PB: predicated region body
PF: predicated region fallthrough
CT: control target
= control target key end

     0   :  { %9 = vsyncpa [#allocation3], 0  ;;  %s2074_s0 = inlined_call_operand.vmem [shape: f32[2048,32], index: 0, kind: input, shape index: {}]   ;;  %s2075_s1 = inlined_call_operand.vmem [shape: f32[24,32], index: 1, kind: input, shape index: {}]   ;;  %s2076_s2 = inlined_call_operand.vmem [shape: f32[24,1], index: 2, kind: input, shape index: {}]   ;;  %s2077_s3 = inlined_call_operand.vmem [shape: f32[1,2048], index: 3, kind: input, shape index: {}]   ;;  %s2078_s4 = inlined_call_operand.hbm [shape: f32[1,2048], index: 4, kind: output, shape index: {}]  }
   0x1   :  { %11 = vsyncpa [#allocation3 + $0x1], 0  ;;  %s1526_s15 = smov 0   ;;  %s1528_s16 = smov 0  }
   0x2   :  { %s1530_s17 = smov 0   ;;  %s1532_s18 = smov 0  }
   0x3 LB: > { %s1547_s19 = sadd.s32 4294967295, %s1496_s18   ;;  %s1098_s20 = sadd.s32 4294967294, %s1496_s18   ;;  %s1496_s18 = sphi %s1532_s18, %s2086_s18   ;;  %s1492_s17 = sphi %s1530_s17, %s2085_s17   ;;  %s1488_s16 = sphi %s1528_s16, %s2084_s16   ;;  %s1484_s15 = sphi %s1526_s15, %s2083_s15  }
   0x4   : > { %s1551_s21 = sadd.s32 1, %s1496_s18   ;;  %s118_s22 = sadd.s32 1, %s1492_s17 }
   0x5   : > { %s115_s23 = ssub.s32 %s1496_s18, %s1551_s21  ;;  %p128_p0 = scmp.ne.s32.totalorder %s1492_s17, %s1488_s16 }
   0x6   : > { %p116_p1 = scmp.eq.s32.totalorder %s115_s23, 0  ;;  %p129_p2 = scmp.eq.s32.totalorder %s1547_s19, 3 }
   0x7   : > { %p134_p3 = scmp.ne.s32.totalorder %s1488_s16, %s1484_s15  ;;  %p135_p4 = scmp.eq.s32.totalorder %s1098_s20, 3 }
   0x8   : > { %s1562_s24 = scalar_select %p116_p1, %s1492_s17, %s118_s22  }
   0x9   : > { %p1564_p5 = por %p129_p2, %p128_p0  ;;  %p1568_p6 = por %p135_p4, %p134_p3 }
   0xa   : > { %p1101_p7 = scmp.ge.s32.totalorder %s1496_s18, 1  ;;  %p176_p8 = scmp.lt.s32.totalorder %s1496_s18, 5 }
   0xc   : > { %p177_p9 = pnand %p1101_p7, %p176_p8 }
   0xd   : > { %s1575_s27 = sshll.u32 (!%p177_p9), %s1547_s19, 6  ;;  %vm303_vm0 = vcmask (!%p177_p9), 261120   ;;  %v1580_v0 = vld [vmem:[%s2075_s1] sm:$0xff] (!%p177_p9)  ;;  %v1498_v2 = vmov (!%p177_p9), 0   ;;  %v287_v3 = vld [vmem:[%s2076_s2 + $0x10] sm:$0xff] (!%p177_p9)  ;;  %v286_v4 = vld [vmem:[%s2076_s2 + $0x8] sm:$0xff] (!%p177_p9) }
   0xe   : > { %180 = sbr.rel (%p177_p9) target bundleno = 405 (0x195), region = 36  ;;  %p207_p10 = scmp.lt.s32.totalorder (!%p177_p9), %s1575_s27, 255  ;;  %1215 = vmatprep.mubr.msk.f32.mxu0 (!%p177_p9), %vm303_vm0, %v1580_v0  ;;  %1253 = vmatprep.mubr.msk.f32.mxu1 (!%p177_p9), %vm303_vm0, %v1580_v0  ;;  %v285_v1 = vld [vmem:[%s2076_s2] sm:$0xff] (!%p177_p9)  ;;  %vm1604_vm1 = vmpackc.low (!%p177_p9), %vm303_vm0, %vm303_vm0 }
   0xf   : > { %1400 = vset.pattern.permute.xlu0 (!%p177_p9), %v1498_v2  ;;  %1401 = vset.pattern.permute.xlu1 (!%p177_p9), %v1498_v2  ;;  %s1105_s29 = sshll.u32 (!%p177_p9), %s1547_s19, 2  ;;  %s203_s19 = sand.u32 (!%p177_p9), 1, %s1488_s16  }
  0x10   : > { %290 = vperm.xlu0 (!%p177_p9), %1400, %v285_v1   ;;  %300 = vperm.xlu1 (!%p177_p9), %1401, %v287_v3   ;;  %p213_p11 = scmp.lt.s32.totalorder (!%p177_p9), %s1105_s29, 15  ;;  %s1102_s7 = sshll.u32 (!%p177_p9), %s203_s19, 2 }
  0x11   : > { %s2032_s12 = scalar_lea.hbm (!%p177_p9), %s2078_s4, %s1575_s27  ;;  %s1016_s13 = scalar_lea.sflag (!%p177_p9), [#allocation3], %s203_s19 }
  0x12   : > { %s1500_s20 = smov (!%p177_p9), [#allocation2]  }
  0x13   : > { %s1438_s22 = sshll.u32 (!%p177_p9), %s1500_s20, 4  ;;  %s1439_s22 = int_to_ptr.vmem [resolvable:$false] %s1438_s22 }
  0x14   : > { %295 = vperm.xlu0 (!%p177_p9), %1400, %v286_v4   ;;  %s1440_s23 = scalar_lea.vmem (!%p177_p9), %s1439_s22, 128 }
  0x15   : > { %s208_s8 = scalar_select %p207_p10, %s1575_s27, 255 }
  0x16   : > { %s2088_s29 = smov (!%p213_p11, %s1105_s29), 15 }
  0x17   : > { %s1104_s11 = sshll.u32 %s208_s8, 3  ;;  %s215_s6 = scalar_lea.vmem %s2077_s3, %s2088_s29 }
  0x18   : > { %s1600_s14 = scalar_lea.vmem %s2074_s0, %s1104_s11  ;;  %s205_s8 = scalar_lea.vmem [#allocation2], %s1102_s7 }
  0x19   : > { %v237_v6 = vld [vmem:[%s1600_s14 + $0x80] sm:$0xff]  ;;  %v238_v7 = vld [vmem:[%s1600_s14 + $0x88] sm:$0xff]  ;;  %v239_v17 = vld [vmem:[%s1600_s14 + $0x90] sm:$0xff]  ;;  %s1030_s9 = sshll.u32 %s205_s8, 4  ;;  %s2034_s9 = int_to_ptr.vmem [resolvable:$true] %s1030_s9 }
  0x1a   : > { %v269_v8 = vld [vmem:[%s1600_s14 + $0x180] sm:$0xff]  ;;  %v1259_v9 = vpack.c.bf16 %v238_v7, %v237_v6  ;;  %v270_v10 = vld [vmem:[%s1600_s14 + $0x188] sm:$0xff]  ;;  %v240_v19 = vld [vmem:[%s1600_s14 + $0x98] sm:$0xff]  ;;  %p1441_p1 = scmp.lt.s32.totalorder %s2034_s9, %s1439_s22 }
  0x1b   : > { %v221_v11 = vld [vmem:[%s1600_s14] sm:$0xff]  ;;  %v222_v12 = vld [vmem:[%s1600_s14 + $0x8] sm:$0xff]  ;;  %v1307_v13 = vpack.c.bf16 %v270_v10, %v269_v8  ;;  %v271_v20 = vld [vmem:[%s1600_s14 + $0x190] sm:$0xff]  ;;  %v1265_v22 = vpack.c.bf16 %v240_v19, %v239_v17 }
  0x1c   : > { %v1262_v14 = vpack.c.bf16 %v222_v12, %v221_v11  ;;  %v253_v15 = vld [vmem:[%s1600_s14 + $0x100] sm:$0xff]  ;;  %v254_v16 = vld [vmem:[%s1600_s14 + $0x108] sm:$0xff]  ;;  %1261 = vmatprep.subr.msk.bf16.mxu0 %vm1604_vm1, %v1259_v9  ;;  %v272_v21 = vld [vmem:[%s1600_s14 + $0x198] sm:$0xff] }
  0x1d   : > { %v1310_v18 = vpack.c.bf16 %v254_v16, %v253_v15  ;;  %1309 = vmatprep.subr.msk.bf16.mxu1 %vm1604_vm1, %v1307_v13  ;;  %v1313_v23 = vpack.c.bf16 %v272_v21, %v271_v20  ;;  %v223_v24 = vld [vmem:[%s1600_s14 + $0x10] sm:$0xff]  ;;  %v224_v25 = vld [vmem:[%s1600_s14 + $0x18] sm:$0xff]  ;;  %v241_v28 = vld [vmem:[%s1600_s14 + $0xa0] sm:$0xff] }
  0x1e   : > { %1264 = vmatpush3.bf16.xpose.msk.msra.mxu0 %vm1604_vm1, %v1262_v14  ;;  %v255_v26 = vld [vmem:[%s1600_s14 + $0x110] sm:$0xff]  ;;  %v256_v27 = vld [vmem:[%s1600_s14 + $0x118] sm:$0xff]  ;;  %v242_v29 = vld [vmem:[%s1600_s14 + $0xa8] sm:$0xff]  ;;  %v1268_v32 = vpack.c.bf16 %v224_v25, %v223_v24 }
  0x1f   : > { %1312 = vmatpush3.bf16.xpose.msk.msra.mxu1 %vm1604_vm1, %v1310_v18  ;;  %1267 = vmatprep.subr.msk.bf16.mxu0 %vm1604_vm1, %v1265_v22  ;;  %v273_v30 = vld [vmem:[%s1600_s14 + $0x1a0] sm:$0xff]  ;;  %v274_v31 = vld [vmem:[%s1600_s14 + $0x1a8] sm:$0xff]  ;;  %v1316_v33 = vpack.c.bf16 %v256_v27, %v255_v26  ;;  %v1271_v34 = vpack.c.bf16 %v242_v29, %v241_v28  ;;  %v243_v40 = vld [vmem:[%s1600_s14 + $0xb0] sm:$0xff] }
  0x20   : > { %1315 = vmatprep.subr.msk.bf16.mxu1 %vm1604_vm1, %v1313_v23  ;;  %v1319_v35 = vpack.c.bf16 %v274_v31, %v273_v30  ;;  %v225_v36 = vld [vmem:[%s1600_s14 + $0x20] sm:$0xff]  ;;  %v226_v37 = vld [vmem:[%s1600_s14 + $0x28] sm:$0xff]  ;;  %v244_v41 = vld [vmem:[%s1600_s14 + $0xb8] sm:$0xff] }
  0x21   : > { %v257_v38 = vld [vmem:[%s1600_s14 + $0x120] sm:$0xff]  ;;  %v258_v39 = vld [vmem:[%s1600_s14 + $0x128] sm:$0xff]  ;;  %v275_v42 = vld [vmem:[%s1600_s14 + $0x1b0] sm:$0xff]  ;;  %v1274_v44 = vpack.c.bf16 %v226_v37, %v225_v36  ;;  %v1277_v46 = vpack.c.bf16 %v244_v41, %v243_v40 }
  0x22   : > { %v276_v43 = vld [vmem:[%s1600_s14 + $0x1b8] sm:$0xff]  ;;  %v1322_v45 = vpack.c.bf16 %v258_v39, %v257_v38  ;;  %v227_v48 = vld [vmem:[%s1600_s14 + $0x30] sm:$0xff]  ;;  %v245_v52 = vld [vmem:[%s1600_s14 + $0xc0] sm:$0xff] }
  0x23   : > { %v1325_v47 = vpack.c.bf16 %v276_v43, %v275_v42  ;;  %v228_v49 = vld [vmem:[%s1600_s14 + $0x38] sm:$0xff]  ;;  %v259_v50 = vld [vmem:[%s1600_s14 + $0x130] sm:$0xff]  ;;  %v246_v53 = vld [vmem:[%s1600_s14 + $0xc8] sm:$0xff] }
  0x24   : > { %v260_v51 = vld [vmem:[%s1600_s14 + $0x138] sm:$0xff]  ;;  %v277_v54 = vld [vmem:[%s1600_s14 + $0x1c0] sm:$0xff]  ;;  %v278_v55 = vld [vmem:[%s1600_s14 + $0x1c8] sm:$0xff]  ;;  %v1280_v56 = vpack.c.bf16 %v228_v49, %v227_v48  ;;  %v1283_v58 = vpack.c.bf16 %v246_v53, %v245_v52 }
  0x25   : > { %v1328_v57 = vpack.c.bf16 %v260_v51, %v259_v50  ;;  %v1331_v59 = vpack.c.bf16 %v278_v55, %v277_v54  ;;  %v229_v60 = vld [vmem:[%s1600_s14 + $0x40] sm:$0xff]  ;;  %v230_v61 = vld [vmem:[%s1600_s14 + $0x48] sm:$0xff]  ;;  %v247_v1 = vld [vmem:[%s1600_s14 + $0xd0] sm:$0xff]  ;;  %v790_v50 = vlaneseq }
  0x26   : > { %1270 = vmatpush3.bf16.xpose.msk.msra.mxu0 %vm1604_vm1, %v1268_v32  ;;  %v261_v62 = vld [vmem:[%s1600_s14 + $0x140] sm:$0xff]  ;;  %v262_v63 = vld [vmem:[%s1600_s14 + $0x148] sm:$0xff]  ;;  %v248_v2 = vld [vmem:[%s1600_s14 + $0xd8] sm:$0xff]  ;;  %v1286_v6 = vpack.c.bf16 %v230_v61, %v229_v60 }
  0x27   : > { %1318 = vmatpush3.bf16.xpose.msk.msra.mxu1 %vm1604_vm1, %v1316_v33  ;;  %1273 = vmatprep.subr.msk.bf16.mxu0 %vm1604_vm1, %v1271_v34  ;;  %v279_v3 = vld [vmem:[%s1600_s14 + $0x1d0] sm:$0xff]  ;;  %v280_v4 = vld [vmem:[%s1600_s14 + $0x1d8] sm:$0xff]  ;;  %v1334_v7 = vpack.c.bf16 %v262_v63, %v261_v62  ;;  %v1289_v8 = vpack.c.bf16 %v248_v2, %v247_v1  ;;  %v249_v14 = vld [vmem:[%s1600_s14 + $0xe0] sm:$0xff]  ;;  %v1759_v53 = vshrl.u32 %v790_v50, 7 }
  0x28   : > { %1321 = vmatprep.subr.msk.bf16.mxu1 %vm1604_vm1, %v1319_v35  ;;  %v1337_v9 = vpack.c.bf16 %v280_v4, %v279_v3  ;;  %v231_v10 = vld [vmem:[%s1600_s14 + $0x50] sm:$0xff]  ;;  %v232_v11 = vld [vmem:[%s1600_s14 + $0x58] sm:$0xff]  ;;  %v250_v15 = vld [vmem:[%s1600_s14 + $0xe8] sm:$0xff] }
  0x29   : > { %v263_v12 = vld [vmem:[%s1600_s14 + $0x150] sm:$0xff]  ;;  %v264_v13 = vld [vmem:[%s1600_s14 + $0x158] sm:$0xff]  ;;  %v281_v16 = vld [vmem:[%s1600_s14 + $0x1e0] sm:$0xff]  ;;  %v1292_v18 = vpack.c.bf16 %v232_v11, %v231_v10  ;;  %v1295_v20 = vpack.c.bf16 %v250_v15, %v249_v14  ;;  %v1765_v60 = vsub.s32 2, %v1759_v53  ;;  %v1770_v2 = vsub.s32 1, %v1759_v53 }
  0x2a   : > { %v282_v17 = vld [vmem:[%s1600_s14 + $0x1e8] sm:$0xff]  ;;  %v1340_v19 = vpack.c.bf16 %v264_v13, %v263_v12  ;;  %v233_v22 = vld [vmem:[%s1600_s14 + $0x60] sm:$0xff]  ;;  %v251_v26 = vld [vmem:[%s1600_s14 + $0xf0] sm:$0xff] }
  0x2b   : > { %v1343_v21 = vpack.c.bf16 %v282_v17, %v281_v16  ;;  %v234_v23 = vld [vmem:[%s1600_s14 + $0x68] sm:$0xff]  ;;  %v265_v24 = vld [vmem:[%s1600_s14 + $0x160] sm:$0xff]  ;;  %v252_v27 = vld [vmem:[%s1600_s14 + $0xf8] sm:$0xff] }
  0x2c   : > { %v266_v25 = vld [vmem:[%s1600_s14 + $0x168] sm:$0xff]  ;;  %v283_v28 = vld [vmem:[%s1600_s14 + $0x1f0] sm:$0xff]  ;;  %v284_v29 = vld [vmem:[%s1600_s14 + $0x1f8] sm:$0xff]  ;;  %v1298_v30 = vpack.c.bf16 %v234_v23, %v233_v22  ;;  %v1301_v32 = vpack.c.bf16 %v252_v27, %v251_v26 }
  0x2d   : > { %v1346_v31 = vpack.c.bf16 %v266_v25, %v265_v24  ;;  %v1349_v33 = vpack.c.bf16 %v284_v29, %v283_v28  ;;  %v235_v34 = vld [vmem:[%s1600_s14 + $0x70] sm:$0xff]  ;;  %v236_v35 = vld [vmem:[%s1600_s14 + $0x78] sm:$0xff]  ;;  %v219_v40 = vld [vmem:[%s2075_s1 + $0x8] sm:$0xff] }
  0x2e   : > { %1276 = vmatpush3.bf16.xpose.msk.msra.mxu0 %vm1604_vm1, %v1274_v44  ;;  %v267_v36 = vld [vmem:[%s1600_s14 + $0x170] sm:$0xff]  ;;  %v268_v37 = vld [vmem:[%s1600_s14 + $0x178] sm:$0xff]  ;;  %v1304_v38 = vpack.c.bf16 %v236_v35, %v235_v34  ;;  %s1434_s14 = scalar_lea.vmem %s2034_s9, 64 }
  0x2f   : > { %1324 = vmatpush3.bf16.xpose.msk.msra.mxu1 %vm1604_vm1, %v1322_v45  ;;  %1279 = vmatprep.subr.msk.bf16.mxu0 %vm1604_vm1, %v1277_v46  ;;  %v1352_v39 = vpack.c.bf16 %v268_v37, %v267_v36  ;;  %v220_v41 = vld [vmem:[%s2075_s1 + $0x10] sm:$0xff]  ;;  %p1435_p12 = scmp.ne.s32.totalorder %s2034_s9, %s1434_s14  ;;  %p1442_p2 = scmp.lt.s32.totalorder %s1440_s23, %s1434_s14 }
  0x30   : > { %1327 = vmatprep.subr.msk.bf16.mxu1 %vm1604_vm1, %v1325_v47 }
  0x31   : > { %p1436_p13 = pnand %p1435_p12, %p1564_p5  ;;  %p1443_p3 = por %p1442_p2, %p1441_p1 }
  0x33   : > { %p1437_p0 = pneg %p1436_p13 }
  0x35   : > { %p1444_p4 = pnand %p1443_p3, %p1437_p0 }
  0x36   : > { %1282 = vmatpush3.bf16.xpose.msk.msra.mxu0 %vm1604_vm1, %v1280_v56 }
  0x37   : > { %1330 = vmatpush3.bf16.xpose.msk.msra.mxu1 %vm1604_vm1, %v1328_v57  ;;  %1285 = vmatprep.subr.msk.bf16.mxu0 %vm1604_vm1, %v1283_v58 }
  0x38   : > { %1333 = vmatprep.subr.msk.bf16.mxu1 %vm1604_vm1, %v1331_v59  ;;  %v1762_v59 = vsub.s32 0, %v1759_v53 }
  0x3e   : > { %1288 = vmatpush3.bf16.xpose.msk.msra.mxu0 %vm1604_vm1, %v1286_v6  ;;  %v1775_v6 = vadd.s32 8, %v1759_v53 }
  0x3f   : > { %1336 = vmatpush3.bf16.xpose.msk.msra.mxu1 %vm1604_vm1, %v1334_v7  ;;  %1291 = vmatprep.subr.msk.bf16.mxu0 %vm1604_vm1, %v1289_v8  ;;  %v1778_v7 = vadd.s32 16, %v1759_v53  ;;  %v1781_v8 = vsub.s32 3, %v1759_v53 }
  0x40   : > { %1339 = vmatprep.subr.msk.bf16.mxu1 %vm1604_vm1, %v1337_v9 }
  0x46   : > { %1294 = vmatpush3.bf16.xpose.msk.msra.mxu0 %vm1604_vm1, %v1292_v18 }
  0x47   : > { %1342 = vmatpush3.bf16.xpose.msk.msra.mxu1 %vm1604_vm1, %v1340_v19  ;;  %1297 = vmatprep.subr.msk.bf16.mxu0 %vm1604_vm1, %v1295_v20 }
  0x48   : > { %1345 = vmatprep.subr.msk.bf16.mxu1 %vm1604_vm1, %v1343_v21 }
  0x4e   : > { %1300 = vmatpush3.bf16.xpose.msk.msra.mxu0 %vm1604_vm1, %v1298_v30 }
  0x4f   : > { %1348 = vmatpush3.bf16.xpose.msk.msra.mxu1 %vm1604_vm1, %v1346_v31  ;;  %1303 = vmatprep.subr.msk.bf16.mxu0 %vm1604_vm1, %v1301_v32 }
  0x50   : > { %1351 = vmatprep.subr.msk.bf16.mxu1 %vm1604_vm1, %v1349_v33 }
  0x56   : > { %1306 = vmatpush3.bf16.xpose.msk.msra.mxu0 %vm1604_vm1, %v1304_v38 }
  0x57   : > { %1354 = vmatpush3.bf16.xpose.msk.msra.mxu1 %vm1604_vm1, %v1352_v39 }
  0x5d   : > { %1216 = vmatmul.mubr.msk.f32.vlgmr.msra.gmra.mrb[0].mxu0 %vm303_vm0, %v1580_v0 }
  0x5e   : > { %1254 = vmatmul.mubr.msk.f32.vlgmr.msra.gmra.mrb[0].mxu1 %vm303_vm0, %v1580_v0  ;;  %1217 = vmatprep.mubr.msk.f32.mxu0 %vm303_vm0, %v219_v40  ;;  %v771_v0 = vld [vmem:[%s215_s6] sm:$0xf] }
  0x5f   : > { %1255 = vmatprep.mubr.msk.f32.mxu1 %vm303_vm0, %v219_v40  ;;  %v772_v5 = vmul.f32 16.0, %v771_v0 }
  0x61   : > { %1218 = vmatmul.mubr.msk.f32.gmra.mrb[2].mxu0 %vm303_vm0, %v219_v40  ;;  %v773_v42 = vceil.f32 %v772_v5 }
  0x62   : > { %1256 = vmatmul.mubr.msk.f32.gmra.mrb[2].mxu1 %vm303_vm0, %v219_v40  ;;  %1219 = vmatprep.mubr.msk.f32.mxu0 %vm303_vm0, %v220_v41 }
  0x63   : > { %1257 = vmatprep.mubr.msk.f32.mxu1 %vm303_vm0, %v220_v41  ;;  %v1176_v43 = vadd.f32 -1.0, %v773_v42  ;;  %v1357_v47 = vtrunc.f32 %v773_v42  ;;  %v774_v55 = vsub.f32 %v773_v42, %v772_v5 }
  0x65   : > { %1220 = vmatmul.mubr.msk.f32.gmra.mrb[4].mxu0 %vm303_vm0, %v220_v41  ;;  %v778_v44 = vadd.f32 1.0, %v1176_v43  ;;  %vm777_vm2 = vcmp.lt.f32.partialorder %v1176_v43, 0.0  ;;  %v1358_v49 = vcvt.f32.s32 %v1357_v47  ;;  %v1767_v1 = vsub.f32 1.0, %v774_v55 }
  0x66   : > { %1258 = vmatmul.mubr.msk.f32.gmra.mrb[4].mxu1 %vm303_vm0, %v220_v41 }
  0x67   : > { %v779_v45 = vsel %vm777_vm2, %v778_v44, %v1176_v43  ;;  %vm786_vm4 = vcmp.gt.s32.totalorder %v1358_v49, 0  ;;  %v822_v29 = vsub.f32 1.0, %v1767_v1 }
  0x68   : > { %v1355_v46 = vtrunc.f32 %v779_v45  ;;  %v787_v54 = vsel %vm786_vm4, %v1358_v49, 0 }
  0x69   : > { %vm788_vm6 = vcmp.lt.s32.totalorder %v787_v54, 16  ;;  %v831_v47 = vrot.slane %v822_v29, %v1770_v2 }
  0x6a   : > { %v1356_v48 = vcvt.f32.s32 %v1355_v46  ;;  %v1772_v4 = vsel %vm788_vm6, %v787_v54, 16  ;;  %v827_v46 = vrot.slane %v822_v29, %v1762_v59 }
  0x6b   : > { %v1826_v34 = vrot.slane %v1772_v4, %v1762_v59 }
  0x6c   : > { %vm781_vm3 = vcmp.gt.s32.totalorder %v1356_v48, 0 }
  0x6d   : > { %v782_v52 = vsel %vm781_vm3, %v1356_v48, 0  ;;  %vm872_vm3 = vcmp.eq.s32.totalorder %v1759_v53, %v1826_v34  ;;  %vm876_vm6 = vcmp.eq.s32.totalorder %v1775_v6, %v1826_v34 }
  0x6e   : > { %vm783_vm5 = vcmp.lt.s32.totalorder %v782_v52, 16 }
  0x6f   : > { %v784_v63 = vsel %vm783_vm5, %v782_v52, 16  ;;  %v839_v52 = vrot.slane %v822_v29, %v1781_v8 }
  0x70   : > { %v1788_v13 = vrot.slane %v784_v63, %v1762_v59  ;;  %v1791_v14 = vrot.slane %v784_v63, %v1765_v60  ;;  %v1808_v24 = vrot.slane %v784_v63, %v1770_v2  ;;  %v1815_v28 = vrot.slane %v784_v63, %v1781_v8 }
  0x72   : > { %vm810_vm7 = vcmp.eq.s32.totalorder %v1759_v53, %v1788_v13  ;;  %vm812_vm8 = vcmp.eq.s32.totalorder %v1759_v53, %v1791_v14  ;;  %vm814_vm9 = vcmp.eq.s32.totalorder %v1775_v6, %v1788_v13  ;;  %vm811_vm10 = vcmp.eq.s32.totalorder %v1759_v53, %v1808_v24 }
  0x73   : > { %vm816_vm11 = vcmp.eq.s32.totalorder %v1775_v6, %v1791_v14  ;;  %vm813_vm12 = vcmp.eq.s32.totalorder %v1759_v53, %v1815_v28  ;;  %vm815_vm13 = vcmp.eq.s32.totalorder %v1775_v6, %v1808_v24  ;;  %vm817_vm14 = vcmp.eq.s32.totalorder %v1775_v6, %v1815_v28 }
  0x74   : > { %vm818_vm15 = vcmp.eq.s32.totalorder %v1778_v7, %v1788_v13  ;;  %vm819_vm0 = vcmp.eq.s32.totalorder %v1778_v7, %v1808_v24  ;;  %vm820_vm1 = vcmp.eq.s32.totalorder %v1778_v7, %v1791_v14  ;;  %vm821_vm2 = vcmp.eq.s32.totalorder %v1778_v7, %v1815_v28 }
  0x8f   : > { %v291_v51 = vpop.permute.xlu0 %290  ;;  %v301_v20 = vpop.permute.xlu1 %300 }
  0x93   : > { %v296_v62 = vpop.permute.xlu0 %295 }
 0x130   : > { %v571_v56 = vpop.f32.mrb[0].mxu0 }
 0x131   : > { %v654_v57 = vpop.f32.mrb[0].mxu1  ;;  %v573_v58 = vpop.f32.mrb[1].mxu0  ;;  %v1783_v9 = vadd.f32 %v571_v56, %v291_v51  ;;  %v1866_v56 = vrot.slane %v1772_v4, %v1770_v2 }
 0x132   : > { %v656_v61 = vpop.f32.mrb[1].mxu1  ;;  %v1793_v15 = vadd.f32 %v654_v57, %v291_v51  ;;  %v1795_v16 = vadd.f32 %v573_v58, %v291_v51 }
 0x133   : > { %v1801_v21 = vadd.f32 %v656_v61, %v291_v51  ;;  %v835_v51 = vrot.slane %v822_v29, %v1765_v60  ;;  %v1870_v61 = vrot.slane %v1772_v4, %v1765_v60  ;;  %v1904_v29 = vsel %vm815_vm13, %v831_v47, 0.0 }
 0x134   : > { %v577_v3 = vpop.f32.mrb[2].mxu0  ;;  %vm873_vm5 = vcmp.eq.s32.totalorder %v1759_v53, %v1866_v56  ;;  %vm881_vm13 = vcmp.eq.s32.totalorder %v1778_v7, %v1866_v56 }
 0x135   : > { %v1785_v10 = vadd.f32 %v577_v3, %v296_v62  ;;  %v660_v11 = vpop.f32.mrb[2].mxu1  ;;  %v579_v12 = vpop.f32.mrb[3].mxu0  ;;  %vm874_vm4 = vcmp.eq.s32.totalorder %v1759_v53, %v1870_v61 }
 0x136   : > { %v1797_v17 = vadd.f32 %v660_v11, %v296_v62  ;;  %v1799_v18 = vadd.f32 %v579_v12, %v296_v62  ;;  %v662_v19 = vpop.f32.mrb[3].mxu1  ;;  %v1879_v11 = vsel %vm810_vm7, %v827_v46, 0.0  ;;  %v1884_v12 = vsel %vm811_vm10, %v831_v47, 0.0 }
 0x137   : > { %v671_v22 = vmax.f32 %v1783_v9, %v1785_v10  ;;  %v1805_v23 = vadd.f32 %v662_v19, %v296_v62  ;;  %v1874_v62 = vrot.slane %v1772_v4, %v1781_v8  ;;  %v1894_v4 = vsel %vm813_vm12, %v839_v52, 0.0 }
 0x138   : > { %v687_v25 = vmax.f32 %v1793_v15, %v1797_v17  ;;  %v679_v26 = vmax.f32 %v1795_v16, %v1799_v18  ;;  %v583_v27 = vpop.f32.mrb[4].mxu0  ;;  %vm877_vm7 = vcmp.eq.s32.totalorder %v1775_v6, %v1866_v56  ;;  %vm882_vm12 = vcmp.eq.s32.totalorder %v1778_v7, %v1870_v61 }
 0x139   : > { %v695_v30 = vmax.f32 %v1801_v21, %v1805_v23  ;;  %v1820_v31 = vadd.f32 %v583_v27, %v301_v20  ;;  %v666_v32 = vpop.f32.mrb[4].mxu1  ;;  %v585_v33 = vpop.f32.mrb[5].mxu0  ;;  %v1899_v27 = vsel %vm814_vm9, %v827_v46, 0.0  ;;  %vm878_vm9 = vcmp.eq.s32.totalorder %v1775_v6, %v1870_v61 }
 0x13a   : > { %v1828_v35 = vadd.f32 %v666_v32, %v301_v20  ;;  %v1830_v36 = vadd.f32 %v585_v33, %v301_v20  ;;  %v668_v37 = vpop.f32.mrb[5].mxu1  ;;  %v1909_v33 = vsel %vm816_vm11, %v835_v51, 0.0  ;;  %vm879_vm10 = vcmp.eq.s32.totalorder %v1775_v6, %v1874_v62 }
 0x13b   : > { %v672_v38 = vmax.f32 %v671_v22, %v1820_v31  ;;  %v1837_v39 = vadd.f32 %v668_v37, %v301_v20  ;;  %v1889_v22 = vsel %vm812_vm8, %v835_v51, 0.0  ;;  %v1914_v37 = vsel %vm817_vm14, %v839_v52, 0.0 }
 0x13c   : > { %v688_v40 = vmax.f32 %v687_v25, %v1828_v35  ;;  %v680_v41 = vmax.f32 %v679_v26, %v1830_v36  ;;  %vm875_vm8 = vcmp.eq.s32.totalorder %v1759_v53, %v1874_v62  ;;  %vm880_vm11 = vcmp.eq.s32.totalorder %v1778_v7, %v1826_v34 }
 0x13d   : > { %v673_v0 = vrot.slane %v672_v38, 4  ;;  %v696_v5 = vmax.f32 %v695_v30, %v1837_v39  ;;  %vm883_vm14 = vcmp.eq.s32.totalorder %v1778_v7, %v1874_v62 }
 0x13e   : > { %v689_v42 = vrot.slane %v688_v40, 4  ;;  %v681_v43 = vrot.slane %v680_v41, 4 }
 0x13f   : > { %v674_v44 = vmax.f32 %v672_v38, %v673_v0  ;;  %v697_v45 = vrot.slane %v696_v5, 4  ;;  %v1926_v0 = vsel %vm819_vm0, %v831_v47, 0.0 }
 0x140   : > { %v690_v48 = vmax.f32 %v688_v40, %v689_v42  ;;  %v682_v49 = vmax.f32 %v680_v41, %v681_v43  ;;  %v1921_v41 = vsel %vm818_vm15, %v827_v46, 0.0  ;;  %v1931_v43 = vsel %vm820_vm1, %v835_v51, 0.0 }
 0x141   : > { %v675_v54 = vrot.slane %v674_v44, 2  ;;  %v698_v55 = vmax.f32 %v696_v5, %v697_v45  ;;  %vm1012_vm15 = vcmp.lt.s32.totalorder %v790_v50, 512 }
 0x142   : > { %v691_v57 = vrot.slane %v690_v48, 2  ;;  %v683_v58 = vrot.slane %v682_v49, 2 }
 0x143   : > { %v676_v63 = vmax.f32 %v674_v44, %v675_v54  ;;  %v699_v3 = vrot.slane %v698_v55, 2  ;;  %v1936_v44 = vsel %vm821_vm2, %v839_v52, 0.0 }
 0x144   : > { %v692_v19 = vmax.f32 %v690_v48, %v691_v57  ;;  %v684_v20 = vmax.f32 %v682_v49, %v683_v58  ;;  %v892_v57 = vrot.slane %v1767_v1, %v1770_v2 }
 0x145   : > { %v677_v25 = vrot.slane %v676_v63, 1  ;;  %v700_v26 = vmax.f32 %v698_v55, %v699_v3 }
 0x146   : > { %v693_v30 = vrot.slane %v692_v19, 1  ;;  %v685_v32 = vrot.slane %v684_v20, 1 }
 0x147   : > { %v678_v38 = vmax.f32 %v676_v63, %v677_v25  ;;  %v701_v40 = vrot.slane %v700_v26, 1  ;;  %v900_v63 = vrot.slane %v1767_v1, %v1781_v8  ;;  %v910_v8 = vsel %vm877_vm7, %v892_v57, 0.0 }
 0x148   : > { %v694_v5 = vmax.f32 %v692_v19, %v693_v30  ;;  %v686_v42 = vmax.f32 %v684_v20, %v685_v32 }
 0x149   : > { %v703_v13 = vsub.f32 %v1783_v9, %v678_v38  ;;  %v707_v45 = vsub.f32 %v1785_v10, %v678_v38  ;;  %v711_v24 = vsub.f32 %v1820_v31, %v678_v38  ;;  %v702_v46 = vmax.f32 %v700_v26, %v701_v40 }
 0x14a   : > { %v705_v47 = vsub.f32 %v1793_v15, %v694_v5  ;;  %v709_v14 = vsub.f32 %v1797_v17, %v694_v5  ;;  %v713_v48 = vsub.f32 %v1828_v35, %v694_v5  ;;  %v704_v28 = vsub.f32 %v1795_v16, %v686_v42 }
 0x14b   : > { %v715_v49 = vmul.f32 1.442695, %v703_v13  ;;  %v723_v51 = vmul.f32 1.442695, %v707_v45  ;;  %v731_v52 = vmul.f32 1.442695, %v711_v24  ;;  %v708_v9 = vsub.f32 %v1799_v18, %v686_v42 }
 0x14c   : > { %v719_v10 = vmul.f32 1.442695, %v705_v47  ;;  %v712_v31 = vsub.f32 %v1830_v36, %v686_v42  ;;  %v727_v15 = vmul.f32 1.442695, %v709_v14  ;;  %v706_v16 = vsub.f32 %v1801_v21, %v702_v46 }
 0x14d   : > { %1402 = vpow2.f32 %v715_v49  ;;  %v888_v17 = vrot.slane %v1767_v1, %v1762_v59  ;;  %v735_v18 = vmul.f32 1.442695, %v713_v48  ;;  %v710_v35 = vsub.f32 %v1805_v23, %v702_v46 }
 0x14e   : > { %1404 = vpow2.f32 %v723_v51  ;;  %v714_v36 = vsub.f32 %v1837_v39, %v702_v46  ;;  %v717_v54 = vmul.f32 1.442695, %v704_v28  ;;  %v725_v21 = vmul.f32 1.442695, %v708_v9 }
 0x14f   : > { %1406 = vpow2.f32 %v731_v52  ;;  %v896_v59 = vrot.slane %v1767_v1, %v1765_v60  ;;  %v733_v23 = vmul.f32 1.442695, %v712_v31  ;;  %v905_v39 = vsel %vm872_vm3, %v888_v17, 0.0 }
 0x150   : > { %1408 = vpow2.f32 %v719_v10  ;;  %v721_v55 = vmul.f32 1.442695, %v706_v16  ;;  %v909_v58 = vsel %vm876_vm6, %v888_v17, 0.0  ;;  %v729_v60 = vmul.f32 1.442695, %v710_v35 }
 0x151   : > { %1410 = vpow2.f32 %v727_v15  ;;  %v913_v3 = vsel %vm880_vm11, %v888_v17, 0.0  ;;  %v737_v19 = vmul.f32 1.442695, %v714_v36  ;;  %v907_v20 = vsel %vm874_vm4, %v896_v59, 0.0 }
 0x152   : > { %1412 = vpow2.f32 %v735_v18  ;;  %v917_v25 = vadd.f32 %v905_v39, %v1879_v11  ;;  %v911_v2 = vsel %vm878_vm9, %v896_v59, 0.0  ;;  %v921_v34 = vadd.f32 %v909_v58, %v1899_v27 }
 0x153   : > { %1414 = vpow2.f32 %v717_v54  ;;  %v906_v1 = vsel %vm873_vm5, %v892_v57, 0.0  ;;  %v915_v26 = vsel %vm882_vm12, %v896_v59, 0.0  ;;  %v919_v27 = vadd.f32 %v907_v20, %v1889_v22 }
 0x154   : > { %1416 = vpow2.f32 %v725_v21  ;;  %v925_v30 = vadd.f32 %v913_v3, %v1921_v41  ;;  %v908_v38 = vsel %vm875_vm8, %v900_v63, 0.0  ;;  %v923_v40 = vadd.f32 %v911_v2, %v1909_v33 }
 0x155   : > { %1418 = vpow2.f32 %v733_v23  ;;  %v912_v61 = vsel %vm879_vm10, %v900_v63, 0.0  ;;  %v914_v22 = vsel %vm881_vm13, %v892_v57, 0.0  ;;  %v916_v24 = vsel %vm883_vm14, %v900_v63, 0.0 }
 0x156   : > { %1420 = vpow2.f32 %v721_v55  ;;  %v918_v46 = vadd.f32 %v906_v1, %v1884_v12  ;;  %v922_v33 = vadd.f32 %v910_v8, %v1904_v29  ;;  %v927_v47 = vadd.f32 %v915_v26, %v1931_v43 }
 0x157   : > { %v1403_v11 = vpop.eup %1402  ;;  %1422 = vpow2.f32 %v729_v60  ;;  %v920_v52 = vadd.f32 %v908_v38, %v1894_v4  ;;  %v926_v9 = vadd.f32 %v914_v22, %v1926_v0  ;;  %v924_v12 = vadd.f32 %v912_v61, %v1914_v37 }
 0x158   : > { %v1405_v32 = vpop.eup %1404  ;;  %1424 = vpow2.f32 %v737_v19  ;;  %v929_v5 = vmul.f32 %v1403_v11, %v917_v25  ;;  %v928_v29 = vadd.f32 %v916_v24, %v1936_v44 }
 0x159   : > { %v1407_v42 = vpop.eup %1406  ;;  %v739_v13 = vadd.f32 %v1405_v32, %v1403_v11  ;;  %v933_v41 = vmul.f32 %v1405_v32, %v921_v34 }
 0x15a   : > { %v1409_v45 = vpop.eup %1408  ;;  %v937_v28 = vmul.f32 %v1407_v42, %v925_v30 }
 0x15b   : > { %v1411_v14 = vpop.eup %1410  ;;  %v740_v48 = vadd.f32 %v1407_v42, %v739_v13  ;;  %v931_v6 = vmul.f32 %v1409_v45, %v919_v27  ;;  %v941_v49 = vadd.f32 %v933_v41, %v929_v5 }
 0x15c   : > { %v1413_v51 = vpop.eup %1412  ;;  %v755_v56 = vadd.f32 %v1411_v14, %v1409_v45  ;;  %v935_v10 = vmul.f32 %v1411_v14, %v923_v40 }
 0x15d   : > { %v1415_v7 = vpop.eup %1414  ;;  %v741_v62 = vrot.slane %v740_v48, 4  ;;  %v942_v31 = vadd.f32 %v941_v49, %v937_v28  ;;  %v939_v17 = vmul.f32 %v1413_v51, %v927_v47 }
 0x15e   : > { %v1417_v43 = vpop.eup %1416  ;;  %v756_v15 = vadd.f32 %v1413_v51, %v755_v56  ;;  %v930_v16 = vmul.f32 %v1415_v7, %v918_v46  ;;  %v957_v18 = vadd.f32 %v935_v10, %v931_v6 }
 0x15f   : > { %v1419_v35 = vpop.eup %1418  ;;  %v742_v36 = vadd.f32 %v741_v62, %v740_v48  ;;  %v747_v54 = vadd.f32 %v1417_v43, %v1415_v7  ;;  %v934_v21 = vmul.f32 %v1417_v43, %v922_v33  ;;  %v943_v4 = vrot.slane %v942_v31, 4 }
 0x160   : > { %v1421_v59 = vpop.eup %1420  ;;  %v757_v0 = vrot.slane %v756_v15, 4  ;;  %v938_v23 = vmul.f32 %v1419_v35, %v926_v9  ;;  %v958_v39 = vadd.f32 %v957_v18, %v939_v17  ;;  %v1499_v18 = vmov 1966171168  }
 0x161   : > { %v1423_v55 = vpop.eup %1422  ;;  %v743_v57 = vrot.slane %v742_v36, 2  ;;  %v748_v37 = vadd.f32 %v1419_v35, %v747_v54  ;;  %v932_v58 = vmul.f32 %v1421_v59, %v920_v52  ;;  %v944_v44 = vadd.f32 %v943_v4, %v942_v31 }
 0x162   : > { %v1425_v60 = vpop.eup %1424  ;;  %v758_v63 = vadd.f32 %v757_v0, %v756_v15  ;;  %v763_v3 = vadd.f32 %v1423_v55, %v1421_v59  ;;  %v936_v19 = vmul.f32 %v1423_v55, %v924_v12  ;;  %v949_v20 = vadd.f32 %v934_v21, %v930_v16 }
 0x163   : > { %v744_v25 = vadd.f32 %v743_v57, %v742_v36  ;;  %v749_v2 = vrot.slane %v748_v37, 4  ;;  %v940_v34 = vmul.f32 %v1425_v60, %v928_v29  ;;  %v959_v26 = vrot.slane %v958_v39, 4 }
 0x164   : > { %v759_v1 = vrot.slane %v758_v63, 2  ;;  %v764_v8 = vadd.f32 %v1425_v60, %v763_v3  ;;  %v950_v11 = vadd.f32 %v949_v20, %v938_v23  ;;  %v945_v32 = vrot.slane %v944_v44, 2 }
 0x165   : > { %v745_v27 = vrot.slane %v744_v25, 1  ;;  %v750_v30 = vadd.f32 %v749_v2, %v748_v37  ;;  %v965_v38 = vadd.f32 %v936_v19, %v932_v58  ;;  %v960_v13 = vadd.f32 %v959_v26, %v958_v39 }
 0x166   : > { %v760_v40 = vadd.f32 %v759_v1, %v758_v63  ;;  %v765_v5 = vrot.slane %v764_v8, 4  ;;  %v951_v42 = vrot.slane %v950_v11, 4  ;;  %v946_v28 = vadd.f32 %v945_v32, %v944_v44 }
 0x167   : > { %v746_v61 = vadd.f32 %v745_v27, %v744_v25  ;;  %v751_v22 = vrot.slane %v750_v30, 2  ;;  %v966_v41 = vadd.f32 %v965_v38, %v940_v34  ;;  %v961_v47 = vrot.slane %v960_v13, 2 }
 0x168   : > { %v761_v45 = vrot.slane %v760_v40, 1  ;;  %v766_v24 = vadd.f32 %v765_v5, %v764_v8  ;;  %v952_v46 = vadd.f32 %v951_v42, %v950_v11  ;;  %v947_v62 = vrot.slane %v946_v28, 1 }
 0x169   : > { %1426 = vrcp.f32 %v746_v61  ;;  %v752_v33 = vadd.f32 %v751_v22, %v750_v30  ;;  %v967_v14 = vrot.slane %v966_v41, 4  ;;  %v962_v10 = vadd.f32 %v961_v47, %v960_v13 }
 0x16a   : > { %v762_v48 = vadd.f32 %v761_v45, %v760_v40  ;;  %v767_v6 = vrot.slane %v766_v24, 2  ;;  %v953_v52 = vrot.slane %v952_v46, 2  ;;  %v948_v15 = vadd.f32 %v947_v62, %v946_v28 }
 0x16b   : > { %v753_v49 = vrot.slane %v752_v33, 1  ;;  %v968_v51 = vadd.f32 %v967_v14, %v966_v41  ;;  %v963_v43 = vrot.slane %v962_v10, 1  ;;  %v988_v35 = vunpack.c.l.s4 %v1499_v18 }
 0x16c   : > { %1428 = vrcp.f32 %v762_v48  ;;  %v768_v56 = vadd.f32 %v767_v6, %v766_v24  ;;  %v954_v31 = vadd.f32 %v953_v52, %v952_v46 }
 0x16d   : > { %v754_v9 = vadd.f32 %v753_v49, %v752_v33  ;;  %v969_v12 = vrot.slane %v968_v51, 2  ;;  %v964_v21 = vadd.f32 %v963_v43, %v962_v10  ;;  %v989_v23 = vunpack.c.0.s8 %v988_v35 }
 0x16e   : > { %v769_v7 = vrot.slane %v768_v56, 1  ;;  %v955_v36 = vrot.slane %v954_v31, 1 }
 0x16f   : > { %1430 = vrcp.f32 %v754_v9  ;;  %v970_v17 = vadd.f32 %v969_v12, %v968_v51  ;;  %v992_v58 = vsub.s32 %v989_v23, %v1759_v53 }
 0x170   : > { %v770_v29 = vadd.f32 %v769_v7, %v768_v56  ;;  %v956_v39 = vadd.f32 %v955_v36, %v954_v31 }
 0x171   : > { %v971_v59 = vrot.slane %v970_v17, 1 }
 0x172   : > { %1432 = vrcp.f32 %v770_v29 }
 0x173   : > { %v1427_v16 = vpop.eup %1426  ;;  %v972_v37 = vadd.f32 %v971_v59, %v970_v17 }
 0x174   : > { %v977_v54 = vmul.f32 %v1427_v16, %v948_v15 }
 0x176   : > { %v1429_v4 = vpop.eup %1428 }
 0x177   : > { %v979_v0 = vmul.f32 %v1429_v4, %v964_v21 }
 0x179   : > { %v1431_v55 = vpop.eup %1430 }
 0x17a   : > { %v978_v57 = vmul.f32 %v1431_v55, %v956_v39 }
 0x17c   : > { %v1433_v44 = vpop.eup %1432  ;;  %v985_v60 = vcombine.low %v977_v54, %v978_v57 }
 0x17d   : > { %v980_v63 = vmul.f32 %v1433_v44, %v972_v37 }
 0x17e   : > { %v993_v19 = vrot.slane %v985_v60, %v992_v58 }
 0x17f   : > { %v986_v3 = vcombine.low %v979_v0, %v980_v63 }
 0x181   : > { %v1000_v20 = vrot.slane %v986_v3, %v992_v58 }
 0x183   : > { %v1001_v25 = vcombine.low %v993_v19, %v1000_v20 }
 0x185   : > { %v1008_v2 = vrot.slane %v1001_v25, %v992_v58 }
 0x187   : > { %1014 = vst.msk [vmem:[%s205_s8] sm:$0xf] %vm1012_vm15, %v1008_v2 }
 0x188   : > { %1447 = shalt.err (!%p1444_p4)
}
 0x189   : > { %s1448_s27 = scalar_lea.hbm %s2032_s12, 64  ;;  %s1452_s30 = scalar_lea.hbm %s2078_s4, 256 }
 0x18a   : > { %p1449_p7 = scmp.ne.s32.totalorder %s2032_s12, %s1448_s27  ;;  %p1453_p10 = scmp.lt.u32.totalorder %s2032_s12, %s2078_s4 }
 0x18b   : > { %p1454_p11 = scmp.lt.u32.totalorder %s1452_s30, %s1448_s27  ;;  %p1456_p13 = scmp.lt.u32.totalorder %s1448_s27, %s2032_s12 }
 0x18c   : > { %p1450_p8 = pnand %p1449_p7, %p1564_p5 }
 0x18d   : > { %p1455_p12 = por %p1454_p11, %p1453_p10 }
 0x18e   : > { %p1451_p9 = pneg %p1450_p8 }
 0x18f   : > { %p1457_p0 = por %p1456_p13, %p1455_p12 }
 0x191   : > { %p1458_p1 = pnand %p1457_p0, %p1451_p9 }
 0x193   : > { %1461 = shalt.err (!%p1458_p1)
}
 0x194   : > { %1359 = dma.vmem_to_hbm [thread:$0]  (%p1564_p5), %s2034_s9, 64, %s2032_s12, %s1016_s13  }
 0x195 PF: > { %p1365_p2 = scmp.ge.s32.totalorder %s1496_s18, 2  ;;  %s1042_s19 = sand.u32 1, %s1484_s15  }
 0x196   : > { %s1043_s7 = scalar_lea.sflag [#allocation3], %s1042_s19 }
 0x197   : > { %p1362_p3 = pnand %p1365_p2, %p1568_p6 }
 0x199   : > { %1479 = dma.done.wait (!%p1362_p3), %s1043_s7, 64  }
 0x19a   : > { %1481 = vsyncadd (!%p1362_p3), %s1043_s7, 4294967232  ;;  %p14_p4 = scmp.ge.s32.totalorder %s1551_s21, 6   ;;  %s2083_s15 = smov %s1488_s16 }
 0x19b   : > { %s2084_s16 = smov %s1492_s17  ;;  %s2085_s17 = smov %s1562_s24 }
 0x19c   : > { %s2086_s18 = smov %s1551_s21  ;;  %16 = sbr.rel (!%p14_p4) target bundleno = 3 (0x3), region = 74 }
 0x1a3   :  { %1048 = vsyncpa [#allocation3], 1 }
 0x1a4   :  { %1050 = vsyncpa [#allocation3 + $0x1], 1 }

</bundles_post_ra>
